<compile_context>
chip_gen: v6e
topology: v6e:2x2x1
jax: 0.10.0
libtpu: 0.0.40
codegen_flags: <defaults>
</compile_context>

<pallas_src>
import functools

import jax
import jax.numpy as jnp
from jax.experimental import pallas as pl
from jax.experimental.pallas import tpu as pltpu

LOG_STD_MIN = -20.0
LOG_STD_MAX = 2.0
NEG_SLOPE = 0.01  # PyTorch F.leaky_relu default negative_slope

H1 = 200
H2 = 100


def _round_up(n, m):
    return ((n + m - 1) // m) * m


def _cdiv(a, b):
    return -(-a // b)


def _leaky_relu(x):
    return jnp.where(x > 0, x, NEG_SLOPE * x)


def policy_mlp_kernel(x_ref,
                      w1_ref, b1_ref, w2_ref, b2_ref,
                      w3_ref, b3_ref, w4_ref, b4_ref,
                      wh_ref, bh_ref,
                      out_ref, *, a_half):
    def dense(h, w_ref, b_ref):
        # Native bf16 x bf16 MXU matmul with f32 accumulation; bias add stays f32.
        return jnp.dot(h.astype(jnp.bfloat16), w_ref[...],
                       preferred_element_type=jnp.float32) + b_ref[...]

    h = _leaky_relu(dense(x_ref[...], w1_ref, b1_ref))
    h = _leaky_relu(dense(h, w2_ref, b2_ref))
    h = _leaky_relu(dense(h, w3_ref, b3_ref))
    h = _leaky_relu(dense(h, w4_ref, b4_ref))
    y = dense(h, wh_ref, bh_ref)             # fused mu | log_std head
    # Clamp only the log_std half (upper lanes). (1, HEADp) mask, broadcast in
    # the where; zero-padded lanes clamp to clip(0) = 0 which is harmless since
    # the host only reads the first action_dim lanes of each half.
    col = jax.lax.broadcasted_iota(jnp.int32, (1, y.shape[1]), 1)
    out_ref[...] = jnp.where(col >= a_half,
                             jnp.clip(y, LOG_STD_MIN, LOG_STD_MAX), y)


def init_params(key, state_dim, action_dim):
    """nn.Linear default init: U(-1/sqrt(fan_in), 1/sqrt(fan_in))."""
    dims = [(state_dim, H1), (H1, H1), (H1, H2), (H2, H2),
            (H2, action_dim), (H2, action_dim)]
    params = []
    for fan_in, fan_out in dims:
        key, kw, kb = jax.random.split(key, 3)
        bound = 1.0 / jnp.sqrt(jnp.float32(fan_in))
        w = jax.random.uniform(kw, (fan_in, fan_out), jnp.float32, -bound, bound)
        b = jax.random.uniform(kb, (fan_out,), jnp.float32, -bound, bound)
        params.append((w, b))
    return params


def prepare_params(params, state_dim, action_dim):
    """One-time: fuse the two heads, zero-pad to TPU tiles, cast weights to bf16."""
    (w1, b1), (w2, b2), (w3, b3), (w4, b4), (wmu, bmu), (wstd, bstd) = params
    S8 = _round_up(max(state_dim, 8), 8)          # contraction dim: 8-mult only
    H1p = _round_up(H1, 128)                       # 256
    H2p = _round_up(H2, 128)                       # 128
    HEADp = _round_up(max(2 * action_dim, 128), 128)
    a_half = HEADp // 2
    assert action_dim <= a_half

    wh = jnp.zeros((H2, HEADp), jnp.float32)
    wh = wh.at[:, :action_dim].set(wmu).at[:, a_half:a_half + action_dim].set(wstd)
    bh = jnp.zeros((HEADp,), jnp.float32)
    bh = bh.at[:action_dim].set(bmu).at[a_half:a_half + action_dim].set(bstd)

    def pad_w(w, rows, cols):
        r, c = w.shape
        return jnp.pad(w, ((0, rows - r), (0, cols - c))).astype(jnp.bfloat16)

    def pad_b(b, cols):
        return jnp.pad(b, (0, cols - b.shape[0]))[None, :].astype(jnp.float32)

    prepared = (
        (pad_w(w1, S8, H1p), pad_b(b1, H1p)),
        (pad_w(w2, H1p, H1p), pad_b(b2, H1p)),
        (pad_w(w3, H1p, H2p), pad_b(b3, H2p)),
        (pad_w(w4, H2p, H2p), pad_b(b4, H2p)),
        (pad_w(wh, H2p, HEADp), pad_b(bh, HEADp)),
    )
    return jax.tree_util.tree_map(jax.device_put, prepared)


@functools.partial(jax.jit, static_argnames=("action_dim",))
def policy_forward(x, prepared, *, action_dim):
    (w1, b1), (w2, b2), (w3, b3), (w4, b4), (wh, bh) = prepared
    batch, state_dim = x.shape
    S8 = w1.shape[0]
    HEADp = wh.shape[1]
    a_half = HEADp // 2

    # Batch blocking:
    #  - Bp < 128 : single block (latency-bound inference path).
    #  - Bp >= 128: at least 2 blocks so both v7x TensorCores get work;
    #               block rows = round_up(cdiv(Bp, n_blocks), 8), ~<= 256.
    Bp = _round_up(max(batch, 8), 8)
    if Bp < 128:
        n_blocks = 1
    else:
        n_blocks = max(2, _cdiv(Bp, 256))
    TB = _round_up(_cdiv(Bp, n_blocks), 8)
    Bp = TB * n_blocks

    # Only the tiny input is padded per call; weights arrive pre-padded bf16.
    x_p = jnp.pad(x.astype(jnp.float32),
                  ((0, Bp - batch), (0, S8 - state_dim)))

    weights = (w1, b1, w2, b2, w3, b3, w4, b4, wh, bh)
    # Constant index_map -> weights are grid-resident (DMA'd once).
    resident_specs = [pl.BlockSpec(a.shape, lambda i: (0, 0)) for a in weights]

    out = pl.pallas_call(
        functools.partial(policy_mlp_kernel, a_half=a_half),
        out_shape=jax.ShapeDtypeStruct((Bp, HEADp), jnp.float32),
        grid=(n_blocks,),
        in_specs=[pl.BlockSpec((TB, S8), lambda i: (i, 0))] + resident_specs,
        out_specs=pl.BlockSpec((TB, HEADp), lambda i: (i, 0)),
        compiler_params=pltpu.CompilerParams(
            dimension_semantics=("parallel",)),
    )(x_p, *weights)

    mu = out[:batch, :action_dim]
    log_std = out[:batch, a_half:a_half + action_dim]
    return mu, log_std


def policy_forward_ref(x, params):
    """Pure-JAX reference mirroring the PyTorch forward at the kernel's
    precision: bf16 weights & activations into each matmul, f32 accumulation,
    bias/leaky_relu/clamp in f32."""
    def mm(h, w):
        return jnp.dot(h.astype(jnp.bfloat16), w.astype(jnp.bfloat16),
                       preferred_element_type=jnp.float32)

    h = x.astype(jnp.float32)
    for i in range(4):
        w, b = params[i]
        h = _leaky_relu(mm(h, w) + b)
    wmu, bmu = params[4]
    wstd, bstd = params[5]
    mu = mm(h, wmu) + bmu
    log_std = jnp.clip(mm(h, wstd) + bstd, LOG_STD_MIN, LOG_STD_MAX)
    return mu, log_std


if __name__ == "__main__":
    state_dim = 8
    action_dim = 2
    batch = 2

    key = jax.random.PRNGKey(0)
    key, kx = jax.random.split(key)
    params = init_params(key, state_dim, action_dim)
    prepared = prepare_params(params, state_dim, action_dim)  # one-time prep
    x = jax.random.normal(kx, (batch, state_dim), jnp.float32)

    mu, log_std = policy_forward(x, prepared, action_dim=action_dim)
    jax.block_until_ready((mu, log_std))

    mu_ref, log_std_ref = policy_forward_ref(x, params)
    assert mu.shape == (batch, action_dim)
    assert log_std.shape == (batch, action_dim)
    assert jnp.allclose(mu, mu_ref, atol=1e-2, rtol=1e-2)
    assert jnp.allclose(log_std, log_std_ref, atol=1e-2, rtol=1e-2)

    print("KERNEL_OK")
</pallas_src>

<mosaic_0001>
module attributes {stable_mosaic.version = 11 : i64} {
  func.func @policy_mlp_kernel(%arg0: i32, %arg1: memref<8x8xf32, #tpu.memory_space<vmem>>, %arg2: memref<8x256xbf16, #tpu.memory_space<vmem>>, %arg3: memref<1x256xf32, #tpu.memory_space<vmem>>, %arg4: memref<256x256xbf16, #tpu.memory_space<vmem>>, %arg5: memref<1x256xf32, #tpu.memory_space<vmem>>, %arg6: memref<256x128xbf16, #tpu.memory_space<vmem>>, %arg7: memref<1x128xf32, #tpu.memory_space<vmem>>, %arg8: memref<128x128xbf16, #tpu.memory_space<vmem>>, %arg9: memref<1x128xf32, #tpu.memory_space<vmem>>, %arg10: memref<128x128xbf16, #tpu.memory_space<vmem>>, %arg11: memref<1x128xf32, #tpu.memory_space<vmem>>, %arg12: memref<8x128xf32, #tpu.memory_space<vmem>>) attributes {dimension_semantics = [#tpu.dimension_semantics<parallel>], iteration_bounds = array<i64: 1>, scalar_prefetch = 0 : i64, scratch_operands = 0 : i64, tpu.core_type = #tpu.core_type<tc>, window_params = [{transform_indices = @transform_0, window_bounds = array<i64: 8, 8>}, {pipeline_mode = #tpu.pipeline_mode<synchronous>, transform_indices = @transform_1, window_bounds = array<i64: 8, 256>}, {pipeline_mode = #tpu.pipeline_mode<synchronous>, transform_indices = @transform_2, window_bounds = array<i64: 1, 256>}, {pipeline_mode = #tpu.pipeline_mode<synchronous>, transform_indices = @transform_3, window_bounds = array<i64: 256, 256>}, {pipeline_mode = #tpu.pipeline_mode<synchronous>, transform_indices = @transform_4, window_bounds = array<i64: 1, 256>}, {pipeline_mode = #tpu.pipeline_mode<synchronous>, transform_indices = @transform_5, window_bounds = array<i64: 256, 128>}, {pipeline_mode = #tpu.pipeline_mode<synchronous>, transform_indices = @transform_6, window_bounds = array<i64: 1, 128>}, {pipeline_mode = #tpu.pipeline_mode<synchronous>, transform_indices = @transform_7, window_bounds = array<i64: 128, 128>}, {pipeline_mode = #tpu.pipeline_mode<synchronous>, transform_indices = @transform_8, window_bounds = array<i64: 1, 128>}, {pipeline_mode = #tpu.pipeline_mode<synchronous>, transform_indices = @transform_9, window_bounds = array<i64: 128, 128>}, {pipeline_mode = #tpu.pipeline_mode<synchronous>, transform_indices = @transform_10, window_bounds = array<i64: 1, 128>}, {transform_indices = @transform_11, window_bounds = array<i64: 8, 128>}]} {
    %c0 = arith.constant 0 : index
    %c0_0 = arith.constant 0 : index
    %0 = vector.load %arg1[%c0, %c0_0] : memref<8x8xf32, #tpu.memory_space<vmem>>, vector<8x8xf32>
    %1 = arith.truncf %0 : vector<8x8xf32> to vector<8x8xbf16>
    %c0_1 = arith.constant 0 : index
    %c0_2 = arith.constant 0 : index
    %2 = vector.load %arg2[%c0_1, %c0_2] : memref<8x256xbf16, #tpu.memory_space<vmem>>, vector<8x256xbf16>
    %cst = arith.constant dense<0.000000e+00> : vector<8x256xf32>
    %3 = tpu.matmul %1, %2, %cst {dimension_numbers = #tpu.dot_dimension_numbers<[1], [0], [0], [1], [0, 0, 1, 1], [], []>} : vector<8x8xbf16>, vector<8x256xbf16>, vector<8x256xf32> -> vector<8x256xf32>
    %c0_3 = arith.constant 0 : index
    %c0_4 = arith.constant 0 : index
    %4 = vector.load %arg3[%c0_3, %c0_4] : memref<1x256xf32, #tpu.memory_space<vmem>>, vector<1x256xf32>
    %5 = vector.broadcast %4 : vector<1x256xf32> to vector<8x256xf32>
    %6 = arith.addf %3, %5 : vector<8x256xf32>
    %cst_5 = arith.constant 0.000000e+00 : f32
    %7 = vector.broadcast %cst_5 : f32 to vector<8x256xf32>
    %8 = arith.cmpf ogt, %6, %7 : vector<8x256xf32>
    %cst_6 = arith.constant 0.00999999977 : f32
    %9 = vector.broadcast %cst_6 : f32 to vector<8x256xf32>
    %10 = arith.mulf %9, %6 : vector<8x256xf32>
    %11 = arith.select %8, %6, %10 : vector<8x256xi1>, vector<8x256xf32>
    %12 = arith.truncf %11 : vector<8x256xf32> to vector<8x256xbf16>
    %c0_7 = arith.constant 0 : index
    %c0_8 = arith.constant 0 : index
    %13 = vector.load %arg4[%c0_7, %c0_8] : memref<256x256xbf16, #tpu.memory_space<vmem>>, vector<256x256xbf16>
    %cst_9 = arith.constant dense<0.000000e+00> : vector<8x256xf32>
    %14 = tpu.matmul %12, %13, %cst_9 {dimension_numbers = #tpu.dot_dimension_numbers<[1], [0], [0], [1], [0, 0, 1, 1], [], []>} : vector<8x256xbf16>, vector<256x256xbf16>, vector<8x256xf32> -> vector<8x256xf32>
    %c0_10 = arith.constant 0 : index
    %c0_11 = arith.constant 0 : index
    %15 = vector.load %arg5[%c0_10, %c0_11] : memref<1x256xf32, #tpu.memory_space<vmem>>, vector<1x256xf32>
    %16 = vector.broadcast %15 : vector<1x256xf32> to vector<8x256xf32>
    %17 = arith.addf %14, %16 : vector<8x256xf32>
    %cst_12 = arith.constant 0.000000e+00 : f32
    %18 = vector.broadcast %cst_12 : f32 to vector<8x256xf32>
    %19 = arith.cmpf ogt, %17, %18 : vector<8x256xf32>
    %cst_13 = arith.constant 0.00999999977 : f32
    %20 = vector.broadcast %cst_13 : f32 to vector<8x256xf32>
    %21 = arith.mulf %20, %17 : vector<8x256xf32>
    %22 = arith.select %19, %17, %21 : vector<8x256xi1>, vector<8x256xf32>
    %23 = arith.truncf %22 : vector<8x256xf32> to vector<8x256xbf16>
    %c0_14 = arith.constant 0 : index
    %c0_15 = arith.constant 0 : index
    %24 = vector.load %arg6[%c0_14, %c0_15] : memref<256x128xbf16, #tpu.memory_space<vmem>>, vector<256x128xbf16>
    %cst_16 = arith.constant dense<0.000000e+00> : vector<8x128xf32>
    %25 = tpu.matmul %23, %24, %cst_16 {dimension_numbers = #tpu.dot_dimension_numbers<[1], [0], [0], [1], [0, 0, 1, 1], [], []>} : vector<8x256xbf16>, vector<256x128xbf16>, vector<8x128xf32> -> vector<8x128xf32>
    %c0_17 = arith.constant 0 : index
    %c0_18 = arith.constant 0 : index
    %26 = vector.load %arg7[%c0_17, %c0_18] : memref<1x128xf32, #tpu.memory_space<vmem>>, vector<1x128xf32>
    %27 = vector.broadcast %26 : vector<1x128xf32> to vector<8x128xf32>
    %28 = arith.addf %25, %27 : vector<8x128xf32>
    %cst_19 = arith.constant 0.000000e+00 : f32
    %29 = vector.broadcast %cst_19 : f32 to vector<8x128xf32>
    %30 = arith.cmpf ogt, %28, %29 : vector<8x128xf32>
    %cst_20 = arith.constant 0.00999999977 : f32
    %31 = vector.broadcast %cst_20 : f32 to vector<8x128xf32>
    %32 = arith.mulf %31, %28 : vector<8x128xf32>
    %33 = arith.select %30, %28, %32 : vector<8x128xi1>, vector<8x128xf32>
    %34 = arith.truncf %33 : vector<8x128xf32> to vector<8x128xbf16>
    %c0_21 = arith.constant 0 : index
    %c0_22 = arith.constant 0 : index
    %35 = vector.load %arg8[%c0_21, %c0_22] : memref<128x128xbf16, #tpu.memory_space<vmem>>, vector<128x128xbf16>
    %cst_23 = arith.constant dense<0.000000e+00> : vector<8x128xf32>
    %36 = tpu.matmul %34, %35, %cst_23 {dimension_numbers = #tpu.dot_dimension_numbers<[1], [0], [0], [1], [0, 0, 1, 1], [], []>} : vector<8x128xbf16>, vector<128x128xbf16>, vector<8x128xf32> -> vector<8x128xf32>
    %c0_24 = arith.constant 0 : index
    %c0_25 = arith.constant 0 : index
    %37 = vector.load %arg9[%c0_24, %c0_25] : memref<1x128xf32, #tpu.memory_space<vmem>>, vector<1x128xf32>
    %38 = vector.broadcast %37 : vector<1x128xf32> to vector<8x128xf32>
    %39 = arith.addf %36, %38 : vector<8x128xf32>
    %cst_26 = arith.constant 0.000000e+00 : f32
    %40 = vector.broadcast %cst_26 : f32 to vector<8x128xf32>
    %41 = arith.cmpf ogt, %39, %40 : vector<8x128xf32>
    %cst_27 = arith.constant 0.00999999977 : f32
    %42 = vector.broadcast %cst_27 : f32 to vector<8x128xf32>
    %43 = arith.mulf %42, %39 : vector<8x128xf32>
    %44 = arith.select %41, %39, %43 : vector<8x128xi1>, vector<8x128xf32>
    %45 = arith.truncf %44 : vector<8x128xf32> to vector<8x128xbf16>
    %c0_28 = arith.constant 0 : index
    %c0_29 = arith.constant 0 : index
    %46 = vector.load %arg10[%c0_28, %c0_29] : memref<128x128xbf16, #tpu.memory_space<vmem>>, vector<128x128xbf16>
    %cst_30 = arith.constant dense<0.000000e+00> : vector<8x128xf32>
    %47 = tpu.matmul %45, %46, %cst_30 {dimension_numbers = #tpu.dot_dimension_numbers<[1], [0], [0], [1], [0, 0, 1, 1], [], []>} : vector<8x128xbf16>, vector<128x128xbf16>, vector<8x128xf32> -> vector<8x128xf32>
    %c0_31 = arith.constant 0 : index
    %c0_32 = arith.constant 0 : index
    %48 = vector.load %arg11[%c0_31, %c0_32] : memref<1x128xf32, #tpu.memory_space<vmem>>, vector<1x128xf32>
    %49 = vector.broadcast %48 : vector<1x128xf32> to vector<8x128xf32>
    %50 = arith.addf %47, %49 : vector<8x128xf32>
    %51 = tpu.iota {dimensions = array<i32: 1>} : vector<1x128xi32>
    %c64_i32 = arith.constant 64 : i32
    %52 = vector.broadcast %c64_i32 : i32 to vector<1x128xi32>
    %53 = arith.cmpi sge, %51, %52 : vector<1x128xi32>
    %cst_33 = arith.constant -2.000000e+01 : f32
    %cst_34 = arith.constant 2.000000e+00 : f32
    %54 = vector.broadcast %cst_33 : f32 to vector<8x128xf32>
    %55 = arith.maximumf %54, %50 : vector<8x128xf32>
    %56 = vector.broadcast %cst_34 : f32 to vector<8x128xf32>
    %57 = arith.minimumf %56, %55 : vector<8x128xf32>
    %58 = vector.shape_cast %53 : vector<1x128xi1> to vector<1x128xi1>
    %59 = vector.broadcast %58 : vector<1x128xi1> to vector<8x128xi1>
    %60 = arith.select %59, %57, %50 : vector<8x128xi1>, vector<8x128xf32>
    %c0_35 = arith.constant 0 : index
    %c0_36 = arith.constant 0 : index
    %61 = vector.load %arg12[%c0_35, %c0_36] : memref<8x128xf32, #tpu.memory_space<vmem>>, vector<8x128xf32>
    tpu.vector_store %arg12[%c0_35, %c0_36], %60 {strides = array<i32>} : memref<8x128xf32, #tpu.memory_space<vmem>>, vector<8x128xf32>,
    return
  }
  func.func @transform_0(%arg0: i32) -> (i32, i32) {
    %c0_i32 = arith.constant 0 : i32
    %c0_i32_0 = arith.constant 0 : i32
    return %arg0, %c0_i32 : i32, i32
  }
  func.func @transform_1(%arg0: i32) -> (i32, i32) {
    %c0_i32 = arith.constant 0 : i32
    %c0_i32_0 = arith.constant 0 : i32
    %c0_i32_1 = arith.constant 0 : i32
    return %c0_i32, %c0_i32_0 : i32, i32
  }
  func.func @transform_2(%arg0: i32) -> (i32, i32) {
    %c0_i32 = arith.constant 0 : i32
    %c0_i32_0 = arith.constant 0 : i32
    %c0_i32_1 = arith.constant 0 : i32
    return %c0_i32, %c0_i32_0 : i32, i32
  }
  func.func @transform_3(%arg0: i32) -> (i32, i32) {
    %c0_i32 = arith.constant 0 : i32
    %c0_i32_0 = arith.constant 0 : i32
    %c0_i32_1 = arith.constant 0 : i32
    return %c0_i32, %c0_i32_0 : i32, i32
  }
  func.func @transform_4(%arg0: i32) -> (i32, i32) {
    %c0_i32 = arith.constant 0 : i32
    %c0_i32_0 = arith.constant 0 : i32
    %c0_i32_1 = arith.constant 0 : i32
    return %c0_i32, %c0_i32_0 : i32, i32
  }
  func.func @transform_5(%arg0: i32) -> (i32, i32) {
    %c0_i32 = arith.constant 0 : i32
    %c0_i32_0 = arith.constant 0 : i32
    %c0_i32_1 = arith.constant 0 : i32
    return %c0_i32, %c0_i32_0 : i32, i32
  }
  func.func @transform_6(%arg0: i32) -> (i32, i32) {
    %c0_i32 = arith.constant 0 : i32
    %c0_i32_0 = arith.constant 0 : i32
    %c0_i32_1 = arith.constant 0 : i32
    return %c0_i32, %c0_i32_0 : i32, i32
  }
  func.func @transform_7(%arg0: i32) -> (i32, i32) {
    %c0_i32 = arith.constant 0 : i32
    %c0_i32_0 = arith.constant 0 : i32
    %c0_i32_1 = arith.constant 0 : i32
    return %c0_i32, %c0_i32_0 : i32, i32
  }
  func.func @transform_8(%arg0: i32) -> (i32, i32) {
    %c0_i32 = arith.constant 0 : i32
    %c0_i32_0 = arith.constant 0 : i32
    %c0_i32_1 = arith.constant 0 : i32
    return %c0_i32, %c0_i32_0 : i32, i32
  }
  func.func @transform_9(%arg0: i32) -> (i32, i32) {
    %c0_i32 = arith.constant 0 : i32
    %c0_i32_0 = arith.constant 0 : i32
    %c0_i32_1 = arith.constant 0 : i32
    return %c0_i32, %c0_i32_0 : i32, i32
  }
  func.func @transform_10(%arg0: i32) -> (i32, i32) {
    %c0_i32 = arith.constant 0 : i32
    %c0_i32_0 = arith.constant 0 : i32
    %c0_i32_1 = arith.constant 0 : i32
    return %c0_i32, %c0_i32_0 : i32, i32
  }
  func.func @transform_11(%arg0: i32) -> (i32, i32) {
    %c0_i32 = arith.constant 0 : i32
    %c0_i32_0 = arith.constant 0 : i32
    return %arg0, %c0_i32 : i32, i32
  }
}

</mosaic_0001>

<bundles_post_ra>
// kernel: policy_forward.1
= control target key start
LH: loop header
LB: loop body
LE: loop exit
PB: predicated region body
PF: predicated region fallthrough
CT: control target
= control target key end

     0   :  { %16 = vsyncpa [#allocation3], 0  ;;  %s1314_s0 = inlined_call_operand.vmem [shape: f32[8,8], index: 0, kind: input, shape index: {}]   ;;  %s1315_s1 = inlined_call_operand.vmem [shape: bf16[8,256], index: 1, kind: input, shape index: {}]   ;;  %s1316_s2 = inlined_call_operand.vmem [shape: f32[1,256], index: 2, kind: input, shape index: {}]   ;;  %s1317_s3 = inlined_call_operand.hbm [shape: bf16[256,256], index: 3, kind: input, shape index: {}]   ;;  %s1318_s4 = inlined_call_operand.vmem [shape: f32[1,256], index: 4, kind: input, shape index: {}]   ;;  %s1319_s5 = inlined_call_operand.hbm [shape: bf16[256,128], index: 5, kind: input, shape index: {}]   ;;  %s1320_s6 = inlined_call_operand.vmem [shape: f32[1,128], index: 6, kind: input, shape index: {}]   ;;  %s1321_s7 = inlined_call_operand.hbm [shape: bf16[128,128], index: 7, kind: input, shape index: {}]   ;;  %s1322_s8 = inlined_call_operand.vmem [shape: f32[1,128], index: 8, kind: input, shape index: {}]   ;;  %s1323_s9 = inlined_call_operand.hbm [shape: bf16[128,128], index: 9, kind: input, shape index: {}]   ;;  %s1324_s10 = inlined_call_operand.vmem [shape: f32[1,128], index: 10, kind: input, shape index: {}]   ;;  %s1325_s11 = inlined_call_operand.vmem [shape: f32[8,128], index: 11, kind: output, shape index: {}]  }
   0x1   :  { %17 = vsyncpa [#allocation5], 0 }
   0x2   :  { %18 = vsyncpa [#allocation8], 0  ;;  %s1178_s17 = smov [#allocation4]  }
   0x3   :  { %s44_s18 = sshll.u32 %s1178_s17, 4  ;;  %s45_s18 = int_to_ptr.vmem [resolvable:$true] %s44_s18 }
   0x4   :  { %s1100_s19 = scalar_lea.vmem %s45_s18, 2048  ;;  %p1105_p1 = scmp.lt.s32.totalorder %s45_s18, %s45_s18 }
   0x5   :  { %p1101_p0 = scmp.ne.s32.totalorder %s45_s18, %s1100_s19  ;;  %p1106_p2 = scmp.lt.s32.totalorder %s1100_s19, %s1100_s19 }
   0x7   :  { %p1107_p3 = por %p1106_p2, %p1105_p1 }
   0x9   :  { %p1108_p4 = pnand %p1107_p3, %p1101_p0 }
   0xb   :  { %1111 = shalt.err (!%p1108_p4)
}
   0xc   :  { %s1179_s20 = smov 64   ;;  %s1180_s21 = smov 4  }
   0xd   :  { %50 = dma.hbm_to_vmem [thread:$0]  %s1319_s5, 2048, %s45_s18, [#allocation5], %s1179_s20, %s1179_s20, %s1180_s21  }
   0xe   :  { %s1181_s24 = smov [#allocation2]  }
   0xf   :  { %s30_s25 = sshll.u32 %s1181_s24, 4  ;;  %s31_s25 = int_to_ptr.vmem [resolvable:$true] %s30_s25 }
  0x10   :  { %s1120_s26 = scalar_lea.vmem %s31_s25, 4096  ;;  %p1125_p6 = scmp.lt.s32.totalorder %s31_s25, %s31_s25 }
  0x11   :  { %p1121_p5 = scmp.ne.s32.totalorder %s31_s25, %s1120_s26  ;;  %p1126_p7 = scmp.lt.s32.totalorder %s1120_s26, %s1120_s26 }
  0x13   :  { %p1127_p8 = por %p1126_p7, %p1125_p6 }
  0x15   :  { %p1128_p9 = pnand %p1127_p8, %p1121_p5 }
  0x17   :  { %1131 = shalt.err (!%p1128_p9)
}
  0x18   :  { %s1182_s27 = smov 128   ;;  %s1183_s28 = smov 8  }
  0x19   :  { %36 = dma.hbm_to_vmem [thread:$0]  %s1317_s3, 4096, %s31_s25, [#allocation3], %s1182_s27, %s1182_s27, %s1183_s28  }
  0x1a   :  { %s1184_s12 = smov [#allocation6]   ;;  %s1185_s14 = smov [#allocation7]  }
  0x1b   :  { %s58_s13 = sshll.u32 %s1184_s12, 4  ;;  %s72_s5 = sshll.u32 %s1185_s14, 4  ;;  %s59_s13 = int_to_ptr.vmem [resolvable:$true] %s58_s13  ;;  %s73_s5 = int_to_ptr.vmem [resolvable:$true] %s72_s5 }
  0x1c   :  { %s1140_s15 = scalar_lea.vmem %s59_s13, 1024  ;;  %p1145_p11 = scmp.lt.s32.totalorder %s59_s13, %s59_s13 }
  0x1d   :  { %p1141_p10 = scmp.ne.s32.totalorder %s59_s13, %s1140_s15  ;;  %p1146_p12 = scmp.lt.s32.totalorder %s1140_s15, %s1140_s15 }
  0x1f   :  { %p1147_p13 = por %p1146_p12, %p1145_p11 }
  0x21   :  { %p1148_p0 = pnand %p1147_p13, %p1141_p10 }
  0x23   :  { %1151 = shalt.err (!%p1148_p0)
}
  0x24   :  { %64 = dma.hbm_to_vmem [thread:$0]  %s1321_s7, 1024, %s59_s13, [#allocation5], %s1179_s20, %s1179_s20, %s1180_s21  }
  0x25   :  { %s1160_s3 = scalar_lea.vmem %s73_s5, 1024  ;;  %p1165_p2 = scmp.lt.s32.totalorder %s73_s5, %s73_s5 }
  0x26   :  { %p1161_p1 = scmp.ne.s32.totalorder %s73_s5, %s1160_s3  ;;  %p1166_p3 = scmp.lt.s32.totalorder %s1160_s3, %s1160_s3 }
  0x28   :  { %p1167_p4 = por %p1166_p3, %p1165_p2 }
  0x2a   :  { %p1168_p5 = pnand %p1167_p4, %p1161_p1 }
  0x2c   :  { %1171 = shalt.err (!%p1168_p5)
}
  0x2d   :  { %78 = dma.hbm_to_vmem [thread:$0]  %s1323_s9, 1024, %s73_s5, [#allocation8], %s1179_s20, %s1179_s20, %s1180_s21  }
  0x2e   :  { %1172 = dma.done.wait [#allocation3], 4096  }
  0x2f   :  { %1173 = vsyncadd [#allocation3], 4294963200 }
  0x30   :  { %1174 = dma.done.wait [#allocation5], 3072  }
  0x31   :  { %1175 = vsyncadd [#allocation5], 4294964224 }
  0x32   :  { %1176 = dma.done.wait [#allocation8], 1024  }
  0x33   :  { %1177 = vsyncadd [#allocation8], 4294966272  ;;  %v1186_v0 = vmov 0   ;;  %v96_v1 = vld [vmem:[%s1315_s1] sm:$0xff]  ;;  %vm118_vm0 = vcmask 1043456   ;;  %vm114_vm1 = vcmask 64512   ;;  %v99_v50 = vlaneseq }
  0x34   :  { %157 = vmatprep.mubr.bf16.mxu0 %v1186_v0  ;;  %v94_v2 = vld [vmem:[%s1314_s0] sm:$0xff]  ;;  %v849_v3 = vcombine.high %v96_v1, %v96_v1  ;;  %v848_v4 = vcombine.low %v96_v1, %v96_v1  ;;  %v1012_v5 = vld [vmem:[#allocation2 + $0x74] ss:$8 sps:$4 sm:$0xff]   ;;  %v1014_v6 = vld [vmem:[#allocation2 + $0x70] ss:$8 sps:$4 sm:$0xff]   ;;  %vm1188_vm6 = vmmov 0  }
  0x35   :  { %v1015_v7 = vld [vmem:[#allocation2 + $0x64] ss:$8 sps:$4 sm:$0xff]   ;;  %v95_v9 = vpack.c.bf16 %v94_v2, %v94_v2  ;;  %378 = vmatprep.subr.bf16.mxu1 %v1012_v5  ;;  %v1017_v10 = vld [vmem:[#allocation2 + $0x60] ss:$8 sps:$4 sm:$0xff]   ;;  %v1018_v11 = vld [vmem:[#allocation2 + $0x54] ss:$8 sps:$4 sm:$0xff]  }
  0x36   :  { %850 = vmatprep.subr.msk.bf16.mxu0 %vm118_vm0, %v849_v3  ;;  %v120_v8 = vsel %vm118_vm0, %v848_v4, 0  ;;  %379 = vmatpush1.bf16.msra.mxu1 %v1014_v6  ;;  %v1020_v12 = vld [vmem:[#allocation2 + $0x50] ss:$8 sps:$4 sm:$0xff]   ;;  %v1021_v13 = vld [vmem:[#allocation2 + $0x44] ss:$8 sps:$4 sm:$0xff]   ;;  %v100_v51 = vshrl.u32 %v99_v50, 7 }
  0x37   :  { %140 = vmatpush1.bf16.msra.mxu0 %v120_v8  ;;  %380 = vmatprep.subr.bf16.mxu1 %v1015_v7  ;;  %v1023_v14 = vld [vmem:[#allocation2 + $0x40] ss:$8 sps:$4 sm:$0xff]   ;;  %v1024_v15 = vld [vmem:[#allocation2 + $0x34] ss:$8 sps:$4 sm:$0xff]   ;;  %v1026_v16 = vld [vmem:[#allocation2 + $0x30] ss:$8 sps:$4 sm:$0xff]  }
  0x38   :  { %v1027_v17 = vld [vmem:[#allocation2 + $0x24] ss:$8 sps:$4 sm:$0xff]   ;;  %v1029_v18 = vld [vmem:[#allocation2 + $0x20] ss:$8 sps:$4 sm:$0xff]   ;;  %v1030_v19 = vld [vmem:[#allocation2 + $0x14] ss:$8 sps:$4 sm:$0xff]  }
  0x39   :  { %v1032_v20 = vld [vmem:[#allocation2 + $0x10] ss:$8 sps:$4 sm:$0xff]   ;;  %v1033_v21 = vld [vmem:[#allocation2 + $0x4] ss:$8 sps:$4 sm:$0xff]   ;;  %v1035_v22 = vld [vmem:[#allocation2] ss:$8 sps:$4 sm:$0xff]  }
  0x3a   :  { %851 = vmatmul.mubr.msk.bf16.vlgmr.msra.gmra.mxu0 %vm114_vm1, %v95_v9  ;;  %381 = vmatpush1.bf16.msra.mxu1 %v1017_v10  ;;  %v1036_v23 = vld [vmem:[#allocation2 + $0xf4] ss:$8 sps:$4 sm:$0xff]   ;;  %v1038_v24 = vld [vmem:[#allocation2 + $0xf0] ss:$8 sps:$4 sm:$0xff]   ;;  %v1039_v25 = vld [vmem:[#allocation2 + $0xe4] ss:$8 sps:$4 sm:$0xff]  }
  0x3b   :  { %382 = vmatprep.subr.bf16.mxu1 %v1018_v11  ;;  %v1041_v26 = vld [vmem:[#allocation2 + $0xe0] ss:$8 sps:$4 sm:$0xff]   ;;  %v1042_v27 = vld [vmem:[#allocation2 + $0xd4] ss:$8 sps:$4 sm:$0xff]   ;;  %v1044_v28 = vld [vmem:[#allocation2 + $0xd0] ss:$8 sps:$4 sm:$0xff]  }
  0x3c   :  { %v1045_v29 = vld [vmem:[#allocation2 + $0xc4] ss:$8 sps:$4 sm:$0xff]   ;;  %v1047_v30 = vld [vmem:[#allocation2 + $0xc0] ss:$8 sps:$4 sm:$0xff]   ;;  %v1048_v31 = vld [vmem:[#allocation2 + $0xb4] ss:$8 sps:$4 sm:$0xff]  }
  0x3d   :  { %v1050_v32 = vld [vmem:[#allocation2 + $0xb0] ss:$8 sps:$4 sm:$0xff]   ;;  %v1051_v33 = vld [vmem:[#allocation2 + $0xa4] ss:$8 sps:$4 sm:$0xff]   ;;  %v1053_v34 = vld [vmem:[#allocation2 + $0xa0] ss:$8 sps:$4 sm:$0xff]  }
  0x3e   :  { %383 = vmatpush1.bf16.msra.mxu1 %v1020_v12  ;;  %v1054_v35 = vld [vmem:[#allocation2 + $0x94] ss:$8 sps:$4 sm:$0xff]   ;;  %v1056_v36 = vld [vmem:[#allocation2 + $0x90] ss:$8 sps:$4 sm:$0xff]   ;;  %v1057_v37 = vld [vmem:[#allocation2 + $0x84] ss:$8 sps:$4 sm:$0xff]  }
  0x3f   :  { %384 = vmatprep.subr.bf16.mxu1 %v1021_v13  ;;  %v1059_v38 = vld [vmem:[#allocation2 + $0x80] ss:$8 sps:$4 sm:$0xff]   ;;  %v1060_v39 = vld [vmem:[#allocation4 + $0x78] sm:$0xff]   ;;  %v1062_v41 = vld [vmem:[#allocation4 + $0x70] sm:$0xff]   ;;  %v101_v52 = vsub.s32 0, %v100_v51  ;;  %v105_v54 = vsub.s32 1, %v100_v51 }
  0x40   :  { %v1061_v40 = vld [vmem:[#allocation4 + $0x38] sm:$0xff]   ;;  %919 = vmatprep.subr.bf16.mxu0 %v1060_v39  ;;  %v1063_v42 = vld [vmem:[#allocation4 + $0x30] sm:$0xff]   ;;  %v1064_v43 = vld [vmem:[#allocation4 + $0x68] sm:$0xff]   ;;  %v1187_v10 = vmov 0.0  }
  0x41   :  { %920 = vmatpush3.bf16.msra.mxu0 %v1061_v40  ;;  %v1065_v44 = vld [vmem:[#allocation4 + $0x28] sm:$0xff]   ;;  %v1066_v45 = vld [vmem:[#allocation4 + $0x60] sm:$0xff]   ;;  %v1068_v47 = vld [vmem:[#allocation4 + $0x58] sm:$0xff]  }
  0x42   :  { %385 = vmatpush1.bf16.msra.mxu1 %v1023_v14  ;;  %921 = vmatprep.subr.bf16.mxu0 %v1062_v41  ;;  %v1067_v46 = vld [vmem:[#allocation4 + $0x20] sm:$0xff]   ;;  %v1069_v48 = vld [vmem:[#allocation4 + $0x18] sm:$0xff]   ;;  %v1070_v49 = vld [vmem:[#allocation4 + $0x50] sm:$0xff]  }
  0x43   :  { %386 = vmatprep.subr.bf16.mxu1 %v1024_v15  ;;  %v97_v53 = vld [vmem:[%s1316_s2] sm:$0x3]  ;;  %v1071_v5 = vld [vmem:[#allocation4 + $0x10] sm:$0xff]   ;;  %v1072_v6 = vld [vmem:[#allocation4 + $0x48] sm:$0xff]  }
  0x44   :  { %v102_v55 = vrot.slane %v97_v53, %v101_v52  ;;  %v106_v56 = vrot.slane %v97_v53, %v105_v54  ;;  %v1073_v7 = vld [vmem:[#allocation4 + $0x8] sm:$0xff]   ;;  %v1074_v8 = vld [vmem:[#allocation4 + $0x40] sm:$0xff]   ;;  %v1089_v39 = vld [vmem:[#allocation7 + $0x10] sm:$0xff]  }
  0x45   :  { %922 = vmatpush3.bf16.msra.mxu0 %v1063_v42  ;;  %v1075_v9 = vld [vmem:[#allocation4] sm:$0xff]   ;;  %v1090_v51 = vld [vmem:[#allocation7 + $0x8] sm:$0xff]  }
  0x46   :  { %387 = vmatpush1.bf16.msra.mxu1 %v1026_v16  ;;  %923 = vmatprep.subr.bf16.mxu0 %v1064_v43  ;;  %v206_v11 = vld [vmem:[%s1318_s4] sm:$0x3] }
  0x47   :  { %388 = vmatprep.subr.bf16.mxu1 %v1027_v17  ;;  %v211_v12 = vrot.slane %v206_v11, %v101_v52  ;;  %v215_v13 = vrot.slane %v206_v11, %v105_v54  ;;  %v884_v41 = vld [vmem:[%s1320_s6] ss:$0 sm:$0xff] }
  0x48   :  { %v1091_v52 = vld [vmem:[#allocation7] sm:$0xff]  }
  0x49   :  { %924 = vmatpush3.bf16.msra.mxu0 %v1065_v44  ;;  %v901_v53 = vld [vmem:[%s1322_s8] ss:$0 sm:$0xff] }
  0x4a   :  { %389 = vmatpush1.bf16.msra.mxu1 %v1029_v18  ;;  %925 = vmatprep.subr.bf16.mxu0 %v1066_v45 }
  0x4b   :  { %390 = vmatprep.subr.bf16.mxu1 %v1030_v19 }
  0x4d   :  { %926 = vmatpush3.bf16.msra.mxu0 %v1067_v46 }
  0x4e   :  { %391 = vmatpush1.bf16.msra.mxu1 %v1032_v20  ;;  %927 = vmatprep.subr.bf16.mxu0 %v1068_v47 }
  0x4f   :  { %392 = vmatprep.subr.bf16.mxu1 %v1033_v21 }
  0x51   :  { %928 = vmatpush3.bf16.msra.mxu0 %v1069_v48 }
  0x52   :  { %393 = vmatpush1.bf16.msra.mxu1 %v1035_v22  ;;  %929 = vmatprep.subr.bf16.mxu0 %v1070_v49 }
  0x53   :  { %394 = vmatprep.subr.bf16.mxu1 %v1036_v23 }
  0x55   :  { %930 = vmatpush3.bf16.msra.mxu0 %v1071_v5 }
  0x56   :  { %395 = vmatpush2.bf16.msra.mxu1 %v1038_v24  ;;  %931 = vmatprep.subr.bf16.mxu0 %v1072_v6 }
  0x57   :  { %396 = vmatprep.subr.bf16.mxu1 %v1039_v25  ;;  %v1076_v25 = vld [vmem:[#allocation6 + $0x38] sm:$0xff]  }
  0x59   :  { %932 = vmatpush3.bf16.msra.mxu0 %v1073_v7 }
  0x5a   :  { %397 = vmatpush2.bf16.msra.mxu1 %v1041_v26  ;;  %933 = vmatprep.subr.bf16.mxu0 %v1074_v8 }
  0x5b   :  { %398 = vmatprep.subr.bf16.mxu1 %v1042_v27  ;;  %v1077_v27 = vld [vmem:[#allocation6 + $0x30] sm:$0xff]  }
  0x5d   :  { %934 = vmatpush3.bf16.msra.mxu0 %v1075_v9 }
  0x5e   :  { %399 = vmatpush2.bf16.msra.mxu1 %v1044_v28  ;;  %959 = vmatprep.subr.bf16.mxu0 %v1187_v10  ;;  %v1078_v28 = vld [vmem:[#allocation6 + $0x28] sm:$0xff]  }
  0x5f   :  { %400 = vmatprep.subr.bf16.mxu1 %v1045_v29  ;;  %v1079_v29 = vld [vmem:[#allocation6 + $0x20] sm:$0xff]  }
  0x62   :  { %401 = vmatpush2.bf16.msra.mxu1 %v1047_v30  ;;  %v1080_v30 = vld [vmem:[#allocation6 + $0x18] sm:$0xff]  }
  0x63   :  { %402 = vmatprep.subr.bf16.mxu1 %v1048_v31  ;;  %v1081_v31 = vld [vmem:[#allocation6 + $0x10] sm:$0xff]  }
  0x66   :  { %403 = vmatpush2.bf16.msra.mxu1 %v1050_v32  ;;  %v1082_v32 = vld [vmem:[#allocation6 + $0x8] sm:$0xff]  }
  0x67   :  { %404 = vmatprep.subr.bf16.mxu1 %v1051_v33  ;;  %v1083_v33 = vld [vmem:[#allocation6] sm:$0xff]  }
  0x6a   :  { %405 = vmatpush2.bf16.msra.mxu1 %v1053_v34  ;;  %v1084_v34 = vld [vmem:[#allocation7 + $0x38] sm:$0xff]  }
  0x6b   :  { %406 = vmatprep.subr.bf16.mxu1 %v1054_v35  ;;  %v1085_v35 = vld [vmem:[#allocation7 + $0x30] sm:$0xff]  }
  0x6e   :  { %407 = vmatpush2.bf16.msra.mxu1 %v1056_v36  ;;  %v1086_v36 = vld [vmem:[#allocation7 + $0x28] sm:$0xff]  }
  0x6f   :  { %408 = vmatprep.subr.bf16.mxu1 %v1057_v37  ;;  %v1087_v37 = vld [vmem:[#allocation7 + $0x20] sm:$0xff]  }
  0x72   :  { %409 = vmatpush2.bf16.msra.mxu1 %v1059_v38  ;;  %v1088_v38 = vld [vmem:[#allocation7 + $0x18] sm:$0xff]  }
  0x73   :  { %979 = vmatprep.subr.bf16.mxu1 %v1187_v10 }
  0xfa   :  { %v159_v57 = vpop.f32.mrf.mxu0 }
  0xfb   :  { %v160_v58 = vadd.f32 %v159_v57, %v102_v55 }
  0xfc   :  { %v161_v59 = vpop.f32.mrf.mxu0 }
  0xfd   :  { %vm166_vm2 = vcmp.gt.f32.partialorder %v160_v58, 0.0  ;;  %v168_v60 = vmul.f32 0.01, %v160_v58  ;;  %v162_v61 = vadd.f32 %v161_v59, %v106_v56 }
  0xfe   :  { %v163_v62 = vpop.f32.mrf.mxu0 }
  0xff   :  { %vm167_vm3 = vcmp.gt.f32.partialorder %v162_v61, 0.0  ;;  %v169_v63 = vmul.f32 0.01, %v162_v61  ;;  %v170_v1 = vsel %vm166_vm2, %v160_v58, %v168_v60  ;;  %v910_v62 = vld [vmem:[%s1324_s10] ss:$0 sm:$0xff] }
 0x100   :  { %v164_v0 = vpop.f32.mrf.mxu0  ;;  %v172_v4 = vpack.c.bf16 %v170_v1, %v170_v1 }
 0x101   :  { %v171_v2 = vsel %vm167_vm3, %v162_v61, %v169_v63  ;;  %v833_v0 = vand.u32 127, %v99_v50 }
 0x102   :  { %v173_v3 = vpack.c.bf16 %v171_v2, %v171_v2 }
 0x103   :  { %vm834_vm9 = vcmp.ge.s32.totalorder %v833_v0, 64 }
 0x104   :  { %410 = vmatprep.mubr.bf16.mxu1 %v173_v3 }
 0x105   :  { %411 = vmatmul.mubr.bf16.vlgmr.msra.gmra.mxu1 %v172_v4 }
 0x106   :  { %995 = vmatprep.mubr.msk.bf16.mxu1 %vm1188_vm6, %v1187_v10  ;;  %980 = vmatpush3.bf16.msra.mxu1 %v1084_v34 }
 0x107   :  { %981 = vmatprep.subr.bf16.mxu1 %v1187_v10 }
 0x10a   :  { %982 = vmatpush3.bf16.msra.mxu1 %v1085_v35 }
 0x10b   :  { %983 = vmatprep.subr.bf16.mxu1 %v1187_v10 }
 0x10e   :  { %984 = vmatpush3.bf16.msra.mxu1 %v1086_v36 }
 0x10f   :  { %985 = vmatprep.subr.bf16.mxu1 %v1187_v10 }
 0x112   :  { %986 = vmatpush3.bf16.msra.mxu1 %v1087_v37 }
 0x113   :  { %987 = vmatprep.subr.bf16.mxu1 %v1187_v10 }
 0x116   :  { %988 = vmatpush3.bf16.msra.mxu1 %v1088_v38 }
 0x117   :  { %989 = vmatprep.subr.bf16.mxu1 %v1187_v10 }
 0x11a   :  { %990 = vmatpush3.bf16.msra.mxu1 %v1089_v39 }
 0x11b   :  { %991 = vmatprep.subr.bf16.mxu1 %v1187_v10 }
 0x11e   :  { %992 = vmatpush3.bf16.msra.mxu1 %v1090_v51 }
 0x11f   :  { %993 = vmatprep.subr.bf16.mxu1 %v1187_v10 }
 0x122   :  { %994 = vmatpush3.bf16.msra.mxu1 %v1091_v52 }
 0x1c5   :  { %v412_v14 = vpop.f32.mrf.mxu1 }
 0x1c6   :  { %v413_v15 = vadd.f32 %v412_v14, %v211_v12 }
 0x1c7   :  { %v414_v16 = vpop.f32.mrf.mxu1 }
 0x1c8   :  { %vm419_vm4 = vcmp.gt.f32.partialorder %v413_v15, 0.0  ;;  %v421_v17 = vmul.f32 0.01, %v413_v15  ;;  %v415_v18 = vadd.f32 %v414_v16, %v215_v13 }
 0x1c9   :  { %v416_v19 = vpop.f32.mrf.mxu1 }
 0x1ca   :  { %vm420_vm5 = vcmp.gt.f32.partialorder %v415_v18, 0.0  ;;  %v422_v20 = vmul.f32 0.01, %v415_v18  ;;  %v423_v21 = vsel %vm419_vm4, %v413_v15, %v421_v17 }
 0x1cb   :  { %v417_v22 = vpop.f32.mrf.mxu1  ;;  %v425_v26 = vpack.c.bf16 %v423_v21, %v423_v21 }
 0x1cc   :  { %v424_v23 = vsel %vm420_vm5, %v415_v18, %v422_v20 }
 0x1cd   :  { %v426_v24 = vpack.c.bf16 %v424_v23, %v424_v23 }
 0x1cf   :  { %594 = vmatprep.mubr.bf16.mxu0 %v426_v24 }
 0x1d0   :  { %595 = vmatmul.mubr.bf16.vlgmr.msra.gmra.mxu0 %v425_v26 }
 0x1d1   :  { %960 = vmatpush3.bf16.msra.mxu0 %v1076_v25  ;;  %975 = vmatprep.mubr.msk.bf16.mxu0 %vm1188_vm6, %v1187_v10 }
 0x1d2   :  { %961 = vmatprep.subr.bf16.mxu0 %v1187_v10 }
 0x1d5   :  { %962 = vmatpush3.bf16.msra.mxu0 %v1077_v27 }
 0x1d6   :  { %963 = vmatprep.subr.bf16.mxu0 %v1187_v10 }
 0x1d9   :  { %964 = vmatpush3.bf16.msra.mxu0 %v1078_v28 }
 0x1da   :  { %965 = vmatprep.subr.bf16.mxu0 %v1187_v10 }
 0x1dd   :  { %966 = vmatpush3.bf16.msra.mxu0 %v1079_v29 }
 0x1de   :  { %967 = vmatprep.subr.bf16.mxu0 %v1187_v10 }
 0x1e1   :  { %968 = vmatpush3.bf16.msra.mxu0 %v1080_v30 }
 0x1e2   :  { %969 = vmatprep.subr.bf16.mxu0 %v1187_v10 }
 0x1e5   :  { %970 = vmatpush3.bf16.msra.mxu0 %v1081_v31 }
 0x1e6   :  { %971 = vmatprep.subr.bf16.mxu0 %v1187_v10 }
 0x1e9   :  { %972 = vmatpush3.bf16.msra.mxu0 %v1082_v32 }
 0x1ea   :  { %973 = vmatprep.subr.bf16.mxu0 %v1187_v10 }
 0x1ed   :  { %974 = vmatpush3.bf16.msra.mxu0 %v1083_v33 }
 0x290   :  { %v935_v40 = vpop.f32.mrf.mxu0 }
 0x292   :  { %v936_v42 = vpop.f32.mrf.mxu0 }
 0x293   :  { %v937_v43 = vadd.f32 %v936_v42, %v935_v40 }
 0x294   :  { %v938_v44 = vpop.f32.mrf.mxu0 }
 0x295   :  { %v597_v45 = vadd.f32 %v937_v43, %v884_v41 }
 0x296   :  { %v939_v46 = vpop.f32.mrf.mxu0 }
 0x297   :  { %vm602_vm7 = vcmp.gt.f32.partialorder %v597_v45, 0.0  ;;  %v603_v47 = vmul.f32 0.01, %v597_v45 }
 0x299   :  { %v604_v48 = vsel %vm602_vm7, %v597_v45, %v603_v47 }
 0x29a   :  { %v605_v49 = vpack.c.bf16 %v604_v48, %v604_v48 }
 0x29c   :  { %976 = vmatmul.mubr.bf16.vlgmr.msra.gmra.mxu0 %v605_v49 }
 0x35c   :  { %v711_v54 = vpop.f32.mrf.mxu0 }
 0x35d   :  { %v712_v55 = vadd.f32 %v901_v53, %v711_v54 }
 0x35e   :  { %v977_v56 = vpop.f32.mrf.mxu0 }
 0x35f   :  { %vm717_vm8 = vcmp.gt.f32.partialorder %v712_v55, 0.0  ;;  %v718_v57 = vmul.f32 0.01, %v712_v55 }
 0x360   :  { %v714_v58 = vpop.f32.mrf.mxu0 }
 0x361   :  { %v719_v59 = vsel %vm717_vm8, %v712_v55, %v718_v57 }
 0x362   :  { %v720_v60 = vpack.c.bf16 %v719_v59, %v719_v59  ;;  %v978_v61 = vpop.f32.mrf.mxu0 }
 0x364   :  { %996 = vmatmul.mubr.bf16.vlgmr.msra.gmra.mxu1 %v720_v60 }
 0x424   :  { %v826_v63 = vpop.f32.mrf.mxu1 }
 0x425   :  { %v827_v1 = vadd.f32 %v910_v62, %v826_v63 }
 0x426   :  { %v997_v2 = vpop.f32.mrf.mxu1 }
 0x427   :  { %v835_v3 = vmax.f32 %v827_v1, -20.0 }
 0x428   :  { %v829_v4 = vpop.f32.mrf.mxu1 }
 0x429   :  { %v836_v5 = vmin.f32 %v835_v3, 2.0 }
 0x42a   :  { %v998_v6 = vpop.f32.mrf.mxu1 }
 0x42b   :  { %v839_v7 = vsel %vm834_vm9, %v836_v5, %v827_v1 }
 0x42c   :  { %840 = vst [vmem:[%s1325_s11] sm:$0xff] %v839_v7 }
 0x42d   :  { %845 = vsyncpa [#allocation3], 1 }
 0x42e   :  { %846 = vsyncpa [#allocation5], 1 }
 0x42f   :  { %847 = vsyncpa [#allocation8], 1 }

</bundles_post_ra>
